<compile_context>
chip_gen: v7x
topology: tpu7x:2x2x1
jax: 0.10.0
libtpu: 0.0.40
codegen_flags: <defaults>
</compile_context>

<pallas_src>
import functools
import math

import jax
import jax.numpy as jnp
import numpy as np
from jax.experimental import pallas as pl
from jax.experimental.pallas import tpu as pltpu

LANES = 128


def _cdf_kernel(x_ref, *refs, filters):
    """x_ref: (BR, 128) tile of one channel's samples (f32, VMEM).

    refs = (hs_0, ta_0, b_0, ..., hs_K, ta_K, b_K, out_ref) where each param
    is a flat 1-D f32 array in SMEM:
        hs_k = softplus(H_k).reshape(-1)   length C * f_out * f_in
        ta_k = tanh(a_k).reshape(-1)       length C * f_out
        b_k  = b_k.reshape(-1)             length C * f_out
    (softplus / tanh are hoisted into the wrapper - parameter-only work.)
    """
    out_ref = refs[-1]
    param_refs = refs[:-1]
    ft = (1,) + tuple(filters) + (1,)
    n_layers = len(ft) - 1

    c = pl.program_id(0)  # channel index

    # hidden state: list of f_in arrays, each (BR, 128)
    h = [x_ref[...]]

    for k in range(n_layers):
        f_in, f_out = ft[k], ft[k + 1]
        hs_ref = param_refs[3 * k + 0]
        ta_ref = param_refs[3 * k + 1]
        b_ref = param_refs[3 * k + 2]
        m_base = c * (f_out * f_in)
        v_base = c * f_out

        new_h = []
        for i in range(f_out):
            # per-channel matmul row i, unrolled scalar-broadcast FMAs
            acc = h[0] * hs_ref[m_base + i * f_in]
            for j in range(1, f_in):
                acc = acc + h[j] * hs_ref[m_base + i * f_in + j]
            acc = acc + b_ref[v_base + i]
            # logits = new + tanh(a) * tanh(new); tanh(a) precomputed
            acc = acc + ta_ref[v_base + i] * jnp.tanh(acc)
            new_h.append(acc)
        h = new_h

    out_ref[...] = h[0].astype(out_ref.dtype)


def make_cdf_params(channels, filters=(3, 3, 3), init_scale=10.0, seed=0):
    """Parameters mirroring the PyTorch __init__ (plus small noise so the
    tanh(a) gating path is actually exercised in the numerical check)."""
    ft = (1,) + tuple(int(f) for f in filters) + (1,)
    scale = float(init_scale) ** (1.0 / (len(filters) + 1))
    key = jax.random.PRNGKey(seed)
    params = []
    for k in range(len(filters) + 1):
        f_in, f_out = ft[k], ft[k + 1]
        H_init = math.log(math.expm1(1.0 / scale / f_out))
        key, k1, k2, k3 = jax.random.split(key, 4)
        H_k = H_init + 0.1 * jax.random.normal(
            k1, (channels, f_out, f_in), dtype=jnp.float32)
        a_k = 0.1 * jax.random.normal(
            k2, (channels, f_out, 1), dtype=jnp.float32)
        b_k = jax.random.uniform(
            k3, (channels, f_out, 1), minval=-0.5, maxval=0.5,
            dtype=jnp.float32)
        params.extend([H_k, a_k, b_k])
    return params


def cdf_forward(inputs, params, filters=(3, 3, 3), *, block_rows=64):
    """inputs: (C, 1, N) float32; returns (C, 1, N) float32.

    `stop_gradient` in the PyTorch module only affects backward (detach of
    params); forward semantics are identical, so it is omitted here.
    """
    C, one, N = inputs.shape
    assert one == 1
    n_layers = len(filters) + 1
    assert len(params) == 3 * n_layers

    # --- hoist parameter-only transforms out of the kernel, flatten to 1-D ---
    flat_params = []
    for k in range(n_layers):
        H = params[3 * k + 0].astype(jnp.float32)
        a = params[3 * k + 1].astype(jnp.float32)
        b = params[3 * k + 2].astype(jnp.float32)
        flat_params.append(jax.nn.softplus(H).reshape(-1))
        flat_params.append(jnp.tanh(a).reshape(-1))
        flat_params.append(b.reshape(-1))

    # --- repack N across sublanes and lanes: (C, 1, N) -> (C, rows, 128) ---
    rows = pl.cdiv(N, LANES)
    br = min(int(block_rows), ((rows + 7) // 8) * 8)
    br = ((br + 7) // 8) * 8                       # sublane-aligned tile rows
    rows_pad = ((rows + br - 1) // br) * br
    n_pad = rows_pad * LANES

    x = inputs.reshape(C, N).astype(jnp.float32)
    if n_pad != N:
        x = jnp.pad(x, ((0, 0), (0, n_pad - N)))
    x = x.reshape(C, rows_pad, LANES)

    grid = (C, rows_pad // br)

    x_spec = pl.BlockSpec((None, br, LANES), lambda c, t: (c, t, 0))
    out_spec = pl.BlockSpec((None, br, LANES), lambda c, t: (c, t, 0))
    # tiny flattened parameters live whole in SMEM (scalar reads in-kernel)
    param_specs = [pl.BlockSpec(memory_space=pltpu.MemorySpace.SMEM)
                   for _ in flat_params]

    kernel = functools.partial(_cdf_kernel, filters=tuple(filters))

    out = pl.pallas_call(
        kernel,
        out_shape=jax.ShapeDtypeStruct((C, rows_pad, LANES), jnp.float32),
        grid_spec=pltpu.PrefetchScalarGridSpec(
            num_scalar_prefetch=0,
            grid=grid,
            in_specs=[x_spec] + param_specs,
            out_specs=out_spec,
        ),
        compiler_params=pltpu.CompilerParams(
            dimension_semantics=("parallel", "parallel")),
    )(x, *flat_params)

    return out.reshape(C, 1, n_pad)[:, :, :N]


def _cdf_reference(inputs, params):
    """Pure-numpy (float64) reference of the PyTorch forward."""
    logits = np.asarray(inputs, dtype=np.float64)
    n_layers = len(params) // 3
    for k in range(n_layers):
        H = np.asarray(params[3 * k + 0], dtype=np.float64)
        a = np.asarray(params[3 * k + 1], dtype=np.float64)
        b = np.asarray(params[3 * k + 2], dtype=np.float64)
        Hs = np.log1p(np.exp(-np.abs(H))) + np.maximum(H, 0.0)  # softplus
        logits = np.einsum("cij,cjn->cin", Hs, logits) + b
        logits = logits + np.tanh(a) * np.tanh(logits)
    return logits


if __name__ == "__main__":
    channels = 4
    N = 256  # samples per channel

    key = jax.random.PRNGKey(0)
    x = jax.random.normal(key, (channels, 1, N), dtype=jnp.float32) * 2.0

    params = make_cdf_params(channels, filters=(3, 3, 3), init_scale=10.0,
                             seed=0)

    out = cdf_forward(x, params, filters=(3, 3, 3))
    out = jax.block_until_ready(out)

    ref = _cdf_reference(np.asarray(x), params)
    np.testing.assert_allclose(np.asarray(out), np.asarray(ref),
                               rtol=1e-5, atol=1e-5)

    print("KERNEL_OK")
</pallas_src>

<mosaic_0001>
module attributes {stable_mosaic.version = 11 : i64} {
  func.func @_cdf_kernel(%arg0: i32, %arg1: i32, %arg2: memref<1x8x128xf32, #tpu.memory_space<vmem>>, %arg3: memref<12xf32, #tpu.memory_space<smem>>, %arg4: memref<12xf32, #tpu.memory_space<smem>>, %arg5: memref<12xf32, #tpu.memory_space<smem>>, %arg6: memref<36xf32, #tpu.memory_space<smem>>, %arg7: memref<12xf32, #tpu.memory_space<smem>>, %arg8: memref<12xf32, #tpu.memory_space<smem>>, %arg9: memref<36xf32, #tpu.memory_space<smem>>, %arg10: memref<12xf32, #tpu.memory_space<smem>>, %arg11: memref<12xf32, #tpu.memory_space<smem>>, %arg12: memref<12xf32, #tpu.memory_space<smem>>, %arg13: memref<4xf32, #tpu.memory_space<smem>>, %arg14: memref<4xf32, #tpu.memory_space<smem>>, %arg15: memref<1x8x128xf32, #tpu.memory_space<vmem>>) attributes {dimension_semantics = [#tpu.dimension_semantics<parallel>, #tpu.dimension_semantics<parallel>], iteration_bounds = array<i64: 4, 1>, scalar_prefetch = 0 : i64, scratch_operands = 0 : i64, tpu.core_type = #tpu.core_type<tc>, window_params = [{transform_indices = @transform_0, window_bounds = array<i64: 1, 8, 128>}, {transform_indices = @transform_1, window_bounds = array<i64: 12>}, {transform_indices = @transform_2, window_bounds = array<i64: 12>}, {transform_indices = @transform_3, window_bounds = array<i64: 12>}, {transform_indices = @transform_4, window_bounds = array<i64: 36>}, {transform_indices = @transform_5, window_bounds = array<i64: 12>}, {transform_indices = @transform_6, window_bounds = array<i64: 12>}, {transform_indices = @transform_7, window_bounds = array<i64: 36>}, {transform_indices = @transform_8, window_bounds = array<i64: 12>}, {transform_indices = @transform_9, window_bounds = array<i64: 12>}, {transform_indices = @transform_10, window_bounds = array<i64: 12>}, {transform_indices = @transform_11, window_bounds = array<i64: 4>}, {transform_indices = @transform_12, window_bounds = array<i64: 4>}, {transform_indices = @transform_13, window_bounds = array<i64: 1, 8, 128>}]} {
    %c0 = arith.constant 0 : index
    %c0_0 = arith.constant 0 : index
    %c0_1 = arith.constant 0 : index
    %0 = vector.load %arg2[%c0, %c0_0, %c0_1] : memref<1x8x128xf32, #tpu.memory_space<vmem>>, vector<1x8x128xf32>
    %1 = vector.shape_cast %0 : vector<1x8x128xf32> to vector<8x128xf32>
    %c3_i32 = arith.constant 3 : i32
    %2 = arith.muli %arg0, %c3_i32 : i32
    %c3_i32_2 = arith.constant 3 : i32
    %3 = arith.muli %arg0, %c3_i32_2 : i32
    %c0_i32 = arith.constant 0 : i32
    %4 = arith.addi %2, %c0_i32 : i32
    %5 = arith.index_cast %4 : i32 to index
    %6 = memref.load %arg3[%5] : memref<12xf32, #tpu.memory_space<smem>>
    %7 = vector.broadcast %6 : f32 to vector<8x128xf32>
    %8 = arith.mulf %1, %7 : vector<8x128xf32>
    %c0_i32_3 = arith.constant 0 : i32
    %9 = arith.addi %3, %c0_i32_3 : i32
    %10 = arith.index_cast %9 : i32 to index
    %11 = memref.load %arg5[%10] : memref<12xf32, #tpu.memory_space<smem>>
    %12 = vector.broadcast %11 : f32 to vector<8x128xf32>
    %13 = arith.addf %8, %12 : vector<8x128xf32>
    %c0_i32_4 = arith.constant 0 : i32
    %14 = arith.addi %3, %c0_i32_4 : i32
    %15 = arith.index_cast %14 : i32 to index
    %16 = memref.load %arg4[%15] : memref<12xf32, #tpu.memory_space<smem>>
    %17 = math.tanh %13 : vector<8x128xf32>
    %18 = vector.broadcast %16 : f32 to vector<8x128xf32>
    %19 = arith.mulf %18, %17 : vector<8x128xf32>
    %20 = arith.addf %13, %19 : vector<8x128xf32>
    %c1_i32 = arith.constant 1 : i32
    %21 = arith.addi %2, %c1_i32 : i32
    %22 = arith.index_cast %21 : i32 to index
    %23 = memref.load %arg3[%22] : memref<12xf32, #tpu.memory_space<smem>>
    %24 = vector.broadcast %23 : f32 to vector<8x128xf32>
    %25 = arith.mulf %1, %24 : vector<8x128xf32>
    %c1_i32_5 = arith.constant 1 : i32
    %26 = arith.addi %3, %c1_i32_5 : i32
    %27 = arith.index_cast %26 : i32 to index
    %28 = memref.load %arg5[%27] : memref<12xf32, #tpu.memory_space<smem>>
    %29 = vector.broadcast %28 : f32 to vector<8x128xf32>
    %30 = arith.addf %25, %29 : vector<8x128xf32>
    %c1_i32_6 = arith.constant 1 : i32
    %31 = arith.addi %3, %c1_i32_6 : i32
    %32 = arith.index_cast %31 : i32 to index
    %33 = memref.load %arg4[%32] : memref<12xf32, #tpu.memory_space<smem>>
    %34 = math.tanh %30 : vector<8x128xf32>
    %35 = vector.broadcast %33 : f32 to vector<8x128xf32>
    %36 = arith.mulf %35, %34 : vector<8x128xf32>
    %37 = arith.addf %30, %36 : vector<8x128xf32>
    %c2_i32 = arith.constant 2 : i32
    %38 = arith.addi %2, %c2_i32 : i32
    %39 = arith.index_cast %38 : i32 to index
    %40 = memref.load %arg3[%39] : memref<12xf32, #tpu.memory_space<smem>>
    %41 = vector.broadcast %40 : f32 to vector<8x128xf32>
    %42 = arith.mulf %1, %41 : vector<8x128xf32>
    %c2_i32_7 = arith.constant 2 : i32
    %43 = arith.addi %3, %c2_i32_7 : i32
    %44 = arith.index_cast %43 : i32 to index
    %45 = memref.load %arg5[%44] : memref<12xf32, #tpu.memory_space<smem>>
    %46 = vector.broadcast %45 : f32 to vector<8x128xf32>
    %47 = arith.addf %42, %46 : vector<8x128xf32>
    %c2_i32_8 = arith.constant 2 : i32
    %48 = arith.addi %3, %c2_i32_8 : i32
    %49 = arith.index_cast %48 : i32 to index
    %50 = memref.load %arg4[%49] : memref<12xf32, #tpu.memory_space<smem>>
    %51 = math.tanh %47 : vector<8x128xf32>
    %52 = vector.broadcast %50 : f32 to vector<8x128xf32>
    %53 = arith.mulf %52, %51 : vector<8x128xf32>
    %54 = arith.addf %47, %53 : vector<8x128xf32>
    %c9_i32 = arith.constant 9 : i32
    %55 = arith.muli %arg0, %c9_i32 : i32
    %c3_i32_9 = arith.constant 3 : i32
    %56 = arith.muli %arg0, %c3_i32_9 : i32
    %c0_i32_10 = arith.constant 0 : i32
    %57 = arith.addi %55, %c0_i32_10 : i32
    %58 = arith.index_cast %57 : i32 to index
    %59 = memref.load %arg6[%58] : memref<36xf32, #tpu.memory_space<smem>>
    %60 = vector.broadcast %59 : f32 to vector<8x128xf32>
    %61 = arith.mulf %20, %60 : vector<8x128xf32>
    %c0_i32_11 = arith.constant 0 : i32
    %62 = arith.addi %55, %c0_i32_11 : i32
    %c1_i32_12 = arith.constant 1 : i32
    %63 = arith.addi %62, %c1_i32_12 : i32
    %64 = arith.index_cast %63 : i32 to index
    %65 = memref.load %arg6[%64] : memref<36xf32, #tpu.memory_space<smem>>
    %66 = vector.broadcast %65 : f32 to vector<8x128xf32>
    %67 = arith.mulf %37, %66 : vector<8x128xf32>
    %68 = arith.addf %61, %67 : vector<8x128xf32>
    %c0_i32_13 = arith.constant 0 : i32
    %69 = arith.addi %55, %c0_i32_13 : i32
    %c2_i32_14 = arith.constant 2 : i32
    %70 = arith.addi %69, %c2_i32_14 : i32
    %71 = arith.index_cast %70 : i32 to index
    %72 = memref.load %arg6[%71] : memref<36xf32, #tpu.memory_space<smem>>
    %73 = vector.broadcast %72 : f32 to vector<8x128xf32>
    %74 = arith.mulf %54, %73 : vector<8x128xf32>
    %75 = arith.addf %68, %74 : vector<8x128xf32>
    %c0_i32_15 = arith.constant 0 : i32
    %76 = arith.addi %56, %c0_i32_15 : i32
    %77 = arith.index_cast %76 : i32 to index
    %78 = memref.load %arg8[%77] : memref<12xf32, #tpu.memory_space<smem>>
    %79 = vector.broadcast %78 : f32 to vector<8x128xf32>
    %80 = arith.addf %75, %79 : vector<8x128xf32>
    %c0_i32_16 = arith.constant 0 : i32
    %81 = arith.addi %56, %c0_i32_16 : i32
    %82 = arith.index_cast %81 : i32 to index
    %83 = memref.load %arg7[%82] : memref<12xf32, #tpu.memory_space<smem>>
    %84 = math.tanh %80 : vector<8x128xf32>
    %85 = vector.broadcast %83 : f32 to vector<8x128xf32>
    %86 = arith.mulf %85, %84 : vector<8x128xf32>
    %87 = arith.addf %80, %86 : vector<8x128xf32>
    %c3_i32_17 = arith.constant 3 : i32
    %88 = arith.addi %55, %c3_i32_17 : i32
    %89 = arith.index_cast %88 : i32 to index
    %90 = memref.load %arg6[%89] : memref<36xf32, #tpu.memory_space<smem>>
    %91 = vector.broadcast %90 : f32 to vector<8x128xf32>
    %92 = arith.mulf %20, %91 : vector<8x128xf32>
    %c3_i32_18 = arith.constant 3 : i32
    %93 = arith.addi %55, %c3_i32_18 : i32
    %c1_i32_19 = arith.constant 1 : i32
    %94 = arith.addi %93, %c1_i32_19 : i32
    %95 = arith.index_cast %94 : i32 to index
    %96 = memref.load %arg6[%95] : memref<36xf32, #tpu.memory_space<smem>>
    %97 = vector.broadcast %96 : f32 to vector<8x128xf32>
    %98 = arith.mulf %37, %97 : vector<8x128xf32>
    %99 = arith.addf %92, %98 : vector<8x128xf32>
    %c3_i32_20 = arith.constant 3 : i32
    %100 = arith.addi %55, %c3_i32_20 : i32
    %c2_i32_21 = arith.constant 2 : i32
    %101 = arith.addi %100, %c2_i32_21 : i32
    %102 = arith.index_cast %101 : i32 to index
    %103 = memref.load %arg6[%102] : memref<36xf32, #tpu.memory_space<smem>>
    %104 = vector.broadcast %103 : f32 to vector<8x128xf32>
    %105 = arith.mulf %54, %104 : vector<8x128xf32>
    %106 = arith.addf %99, %105 : vector<8x128xf32>
    %c1_i32_22 = arith.constant 1 : i32
    %107 = arith.addi %56, %c1_i32_22 : i32
    %108 = arith.index_cast %107 : i32 to index
    %109 = memref.load %arg8[%108] : memref<12xf32, #tpu.memory_space<smem>>
    %110 = vector.broadcast %109 : f32 to vector<8x128xf32>
    %111 = arith.addf %106, %110 : vector<8x128xf32>
    %c1_i32_23 = arith.constant 1 : i32
    %112 = arith.addi %56, %c1_i32_23 : i32
    %113 = arith.index_cast %112 : i32 to index
    %114 = memref.load %arg7[%113] : memref<12xf32, #tpu.memory_space<smem>>
    %115 = math.tanh %111 : vector<8x128xf32>
    %116 = vector.broadcast %114 : f32 to vector<8x128xf32>
    %117 = arith.mulf %116, %115 : vector<8x128xf32>
    %118 = arith.addf %111, %117 : vector<8x128xf32>
    %c6_i32 = arith.constant 6 : i32
    %119 = arith.addi %55, %c6_i32 : i32
    %120 = arith.index_cast %119 : i32 to index
    %121 = memref.load %arg6[%120] : memref<36xf32, #tpu.memory_space<smem>>
    %122 = vector.broadcast %121 : f32 to vector<8x128xf32>
    %123 = arith.mulf %20, %122 : vector<8x128xf32>
    %c6_i32_24 = arith.constant 6 : i32
    %124 = arith.addi %55, %c6_i32_24 : i32
    %c1_i32_25 = arith.constant 1 : i32
    %125 = arith.addi %124, %c1_i32_25 : i32
    %126 = arith.index_cast %125 : i32 to index
    %127 = memref.load %arg6[%126] : memref<36xf32, #tpu.memory_space<smem>>
    %128 = vector.broadcast %127 : f32 to vector<8x128xf32>
    %129 = arith.mulf %37, %128 : vector<8x128xf32>
    %130 = arith.addf %123, %129 : vector<8x128xf32>
    %c6_i32_26 = arith.constant 6 : i32
    %131 = arith.addi %55, %c6_i32_26 : i32
    %c2_i32_27 = arith.constant 2 : i32
    %132 = arith.addi %131, %c2_i32_27 : i32
    %133 = arith.index_cast %132 : i32 to index
    %134 = memref.load %arg6[%133] : memref<36xf32, #tpu.memory_space<smem>>
    %135 = vector.broadcast %134 : f32 to vector<8x128xf32>
    %136 = arith.mulf %54, %135 : vector<8x128xf32>
    %137 = arith.addf %130, %136 : vector<8x128xf32>
    %c2_i32_28 = arith.constant 2 : i32
    %138 = arith.addi %56, %c2_i32_28 : i32
    %139 = arith.index_cast %138 : i32 to index
    %140 = memref.load %arg8[%139] : memref<12xf32, #tpu.memory_space<smem>>
    %141 = vector.broadcast %140 : f32 to vector<8x128xf32>
    %142 = arith.addf %137, %141 : vector<8x128xf32>
    %c2_i32_29 = arith.constant 2 : i32
    %143 = arith.addi %56, %c2_i32_29 : i32
    %144 = arith.index_cast %143 : i32 to index
    %145 = memref.load %arg7[%144] : memref<12xf32, #tpu.memory_space<smem>>
    %146 = math.tanh %142 : vector<8x128xf32>
    %147 = vector.broadcast %145 : f32 to vector<8x128xf32>
    %148 = arith.mulf %147, %146 : vector<8x128xf32>
    %149 = arith.addf %142, %148 : vector<8x128xf32>
    %c9_i32_30 = arith.constant 9 : i32
    %150 = arith.muli %arg0, %c9_i32_30 : i32
    %c3_i32_31 = arith.constant 3 : i32
    %151 = arith.muli %arg0, %c3_i32_31 : i32
    %c0_i32_32 = arith.constant 0 : i32
    %152 = arith.addi %150, %c0_i32_32 : i32
    %153 = arith.index_cast %152 : i32 to index
    %154 = memref.load %arg9[%153] : memref<36xf32, #tpu.memory_space<smem>>
    %155 = vector.broadcast %154 : f32 to vector<8x128xf32>
    %156 = arith.mulf %87, %155 : vector<8x128xf32>
    %c0_i32_33 = arith.constant 0 : i32
    %157 = arith.addi %150, %c0_i32_33 : i32
    %c1_i32_34 = arith.constant 1 : i32
    %158 = arith.addi %157, %c1_i32_34 : i32
    %159 = arith.index_cast %158 : i32 to index
    %160 = memref.load %arg9[%159] : memref<36xf32, #tpu.memory_space<smem>>
    %161 = vector.broadcast %160 : f32 to vector<8x128xf32>
    %162 = arith.mulf %118, %161 : vector<8x128xf32>
    %163 = arith.addf %156, %162 : vector<8x128xf32>
    %c0_i32_35 = arith.constant 0 : i32
    %164 = arith.addi %150, %c0_i32_35 : i32
    %c2_i32_36 = arith.constant 2 : i32
    %165 = arith.addi %164, %c2_i32_36 : i32
    %166 = arith.index_cast %165 : i32 to index
    %167 = memref.load %arg9[%166] : memref<36xf32, #tpu.memory_space<smem>>
    %168 = vector.broadcast %167 : f32 to vector<8x128xf32>
    %169 = arith.mulf %149, %168 : vector<8x128xf32>
    %170 = arith.addf %163, %169 : vector<8x128xf32>
    %c0_i32_37 = arith.constant 0 : i32
    %171 = arith.addi %151, %c0_i32_37 : i32
    %172 = arith.index_cast %171 : i32 to index
    %173 = memref.load %arg11[%172] : memref<12xf32, #tpu.memory_space<smem>>
    %174 = vector.broadcast %173 : f32 to vector<8x128xf32>
    %175 = arith.addf %170, %174 : vector<8x128xf32>
    %c0_i32_38 = arith.constant 0 : i32
    %176 = arith.addi %151, %c0_i32_38 : i32
    %177 = arith.index_cast %176 : i32 to index
    %178 = memref.load %arg10[%177] : memref<12xf32, #tpu.memory_space<smem>>
    %179 = math.tanh %175 : vector<8x128xf32>
    %180 = vector.broadcast %178 : f32 to vector<8x128xf32>
    %181 = arith.mulf %180, %179 : vector<8x128xf32>
    %182 = arith.addf %175, %181 : vector<8x128xf32>
    %c3_i32_39 = arith.constant 3 : i32
    %183 = arith.addi %150, %c3_i32_39 : i32
    %184 = arith.index_cast %183 : i32 to index
    %185 = memref.load %arg9[%184] : memref<36xf32, #tpu.memory_space<smem>>
    %186 = vector.broadcast %185 : f32 to vector<8x128xf32>
    %187 = arith.mulf %87, %186 : vector<8x128xf32>
    %c3_i32_40 = arith.constant 3 : i32
    %188 = arith.addi %150, %c3_i32_40 : i32
    %c1_i32_41 = arith.constant 1 : i32
    %189 = arith.addi %188, %c1_i32_41 : i32
    %190 = arith.index_cast %189 : i32 to index
    %191 = memref.load %arg9[%190] : memref<36xf32, #tpu.memory_space<smem>>
    %192 = vector.broadcast %191 : f32 to vector<8x128xf32>
    %193 = arith.mulf %118, %192 : vector<8x128xf32>
    %194 = arith.addf %187, %193 : vector<8x128xf32>
    %c3_i32_42 = arith.constant 3 : i32
    %195 = arith.addi %150, %c3_i32_42 : i32
    %c2_i32_43 = arith.constant 2 : i32
    %196 = arith.addi %195, %c2_i32_43 : i32
    %197 = arith.index_cast %196 : i32 to index
    %198 = memref.load %arg9[%197] : memref<36xf32, #tpu.memory_space<smem>>
    %199 = vector.broadcast %198 : f32 to vector<8x128xf32>
    %200 = arith.mulf %149, %199 : vector<8x128xf32>
    %201 = arith.addf %194, %200 : vector<8x128xf32>
    %c1_i32_44 = arith.constant 1 : i32
    %202 = arith.addi %151, %c1_i32_44 : i32
    %203 = arith.index_cast %202 : i32 to index
    %204 = memref.load %arg11[%203] : memref<12xf32, #tpu.memory_space<smem>>
    %205 = vector.broadcast %204 : f32 to vector<8x128xf32>
    %206 = arith.addf %201, %205 : vector<8x128xf32>
    %c1_i32_45 = arith.constant 1 : i32
    %207 = arith.addi %151, %c1_i32_45 : i32
    %208 = arith.index_cast %207 : i32 to index
    %209 = memref.load %arg10[%208] : memref<12xf32, #tpu.memory_space<smem>>
    %210 = math.tanh %206 : vector<8x128xf32>
    %211 = vector.broadcast %209 : f32 to vector<8x128xf32>
    %212 = arith.mulf %211, %210 : vector<8x128xf32>
    %213 = arith.addf %206, %212 : vector<8x128xf32>
    %c6_i32_46 = arith.constant 6 : i32
    %214 = arith.addi %150, %c6_i32_46 : i32
    %215 = arith.index_cast %214 : i32 to index
    %216 = memref.load %arg9[%215] : memref<36xf32, #tpu.memory_space<smem>>
    %217 = vector.broadcast %216 : f32 to vector<8x128xf32>
    %218 = arith.mulf %87, %217 : vector<8x128xf32>
    %c6_i32_47 = arith.constant 6 : i32
    %219 = arith.addi %150, %c6_i32_47 : i32
    %c1_i32_48 = arith.constant 1 : i32
    %220 = arith.addi %219, %c1_i32_48 : i32
    %221 = arith.index_cast %220 : i32 to index
    %222 = memref.load %arg9[%221] : memref<36xf32, #tpu.memory_space<smem>>
    %223 = vector.broadcast %222 : f32 to vector<8x128xf32>
    %224 = arith.mulf %118, %223 : vector<8x128xf32>
    %225 = arith.addf %218, %224 : vector<8x128xf32>
    %c6_i32_49 = arith.constant 6 : i32
    %226 = arith.addi %150, %c6_i32_49 : i32
    %c2_i32_50 = arith.constant 2 : i32
    %227 = arith.addi %226, %c2_i32_50 : i32
    %228 = arith.index_cast %227 : i32 to index
    %229 = memref.load %arg9[%228] : memref<36xf32, #tpu.memory_space<smem>>
    %230 = vector.broadcast %229 : f32 to vector<8x128xf32>
    %231 = arith.mulf %149, %230 : vector<8x128xf32>
    %232 = arith.addf %225, %231 : vector<8x128xf32>
    %c2_i32_51 = arith.constant 2 : i32
    %233 = arith.addi %151, %c2_i32_51 : i32
    %234 = arith.index_cast %233 : i32 to index
    %235 = memref.load %arg11[%234] : memref<12xf32, #tpu.memory_space<smem>>
    %236 = vector.broadcast %235 : f32 to vector<8x128xf32>
    %237 = arith.addf %232, %236 : vector<8x128xf32>
    %c2_i32_52 = arith.constant 2 : i32
    %238 = arith.addi %151, %c2_i32_52 : i32
    %239 = arith.index_cast %238 : i32 to index
    %240 = memref.load %arg10[%239] : memref<12xf32, #tpu.memory_space<smem>>
    %241 = math.tanh %237 : vector<8x128xf32>
    %242 = vector.broadcast %240 : f32 to vector<8x128xf32>
    %243 = arith.mulf %242, %241 : vector<8x128xf32>
    %244 = arith.addf %237, %243 : vector<8x128xf32>
    %c3_i32_53 = arith.constant 3 : i32
    %245 = arith.muli %arg0, %c3_i32_53 : i32
    %c1_i32_54 = arith.constant 1 : i32
    %246 = arith.muli %arg0, %c1_i32_54 : i32
    %c0_i32_55 = arith.constant 0 : i32
    %247 = arith.addi %245, %c0_i32_55 : i32
    %248 = arith.index_cast %247 : i32 to index
    %249 = memref.load %arg12[%248] : memref<12xf32, #tpu.memory_space<smem>>
    %250 = vector.broadcast %249 : f32 to vector<8x128xf32>
    %251 = arith.mulf %182, %250 : vector<8x128xf32>
    %c0_i32_56 = arith.constant 0 : i32
    %252 = arith.addi %245, %c0_i32_56 : i32
    %c1_i32_57 = arith.constant 1 : i32
    %253 = arith.addi %252, %c1_i32_57 : i32
    %254 = arith.index_cast %253 : i32 to index
    %255 = memref.load %arg12[%254] : memref<12xf32, #tpu.memory_space<smem>>
    %256 = vector.broadcast %255 : f32 to vector<8x128xf32>
    %257 = arith.mulf %213, %256 : vector<8x128xf32>
    %258 = arith.addf %251, %257 : vector<8x128xf32>
    %c0_i32_58 = arith.constant 0 : i32
    %259 = arith.addi %245, %c0_i32_58 : i32
    %c2_i32_59 = arith.constant 2 : i32
    %260 = arith.addi %259, %c2_i32_59 : i32
    %261 = arith.index_cast %260 : i32 to index
    %262 = memref.load %arg12[%261] : memref<12xf32, #tpu.memory_space<smem>>
    %263 = vector.broadcast %262 : f32 to vector<8x128xf32>
    %264 = arith.mulf %244, %263 : vector<8x128xf32>
    %265 = arith.addf %258, %264 : vector<8x128xf32>
    %c0_i32_60 = arith.constant 0 : i32
    %266 = arith.addi %246, %c0_i32_60 : i32
    %267 = arith.index_cast %266 : i32 to index
    %268 = memref.load %arg14[%267] : memref<4xf32, #tpu.memory_space<smem>>
    %269 = vector.broadcast %268 : f32 to vector<8x128xf32>
    %270 = arith.addf %265, %269 : vector<8x128xf32>
    %c0_i32_61 = arith.constant 0 : i32
    %271 = arith.addi %246, %c0_i32_61 : i32
    %272 = arith.index_cast %271 : i32 to index
    %273 = memref.load %arg13[%272] : memref<4xf32, #tpu.memory_space<smem>>
    %274 = math.tanh %270 : vector<8x128xf32>
    %275 = vector.broadcast %273 : f32 to vector<8x128xf32>
    %276 = arith.mulf %275, %274 : vector<8x128xf32>
    %277 = arith.addf %270, %276 : vector<8x128xf32>
    %c0_62 = arith.constant 0 : index
    %c0_63 = arith.constant 0 : index
    %c0_64 = arith.constant 0 : index
    %278 = vector.load %arg15[%c0_62, %c0_63, %c0_64] : memref<1x8x128xf32, #tpu.memory_space<vmem>>, vector<1x8x128xf32>
    %279 = vector.shape_cast %278 : vector<1x8x128xf32> to vector<8x128xf32>
    %280 = vector.shape_cast %277 : vector<8x128xf32> to vector<1x8x128xf32>
    tpu.vector_store %arg15[%c0_62, %c0_63, %c0_64], %280 {strides = array<i32>} : memref<1x8x128xf32, #tpu.memory_space<vmem>>, vector<1x8x128xf32>,
    return
  }
  func.func @transform_0(%arg0: i32, %arg1: i32) -> (i32, i32, i32) {
    %c0_i32 = arith.constant 0 : i32
    %c0_i32_0 = arith.constant 0 : i32
    return %arg0, %arg1, %c0_i32 : i32, i32, i32
  }
  func.func @transform_1(%arg0: i32, %arg1: i32) -> i32 {
    %c0_i32 = arith.constant 0 : i32
    %c0_i32_0 = arith.constant 0 : i32
    return %c0_i32 : i32
  }
  func.func @transform_2(%arg0: i32, %arg1: i32) -> i32 {
    %c0_i32 = arith.constant 0 : i32
    %c0_i32_0 = arith.constant 0 : i32
    return %c0_i32 : i32
  }
  func.func @transform_3(%arg0: i32, %arg1: i32) -> i32 {
    %c0_i32 = arith.constant 0 : i32
    %c0_i32_0 = arith.constant 0 : i32
    return %c0_i32 : i32
  }
  func.func @transform_4(%arg0: i32, %arg1: i32) -> i32 {
    %c0_i32 = arith.constant 0 : i32
    %c0_i32_0 = arith.constant 0 : i32
    return %c0_i32 : i32
  }
  func.func @transform_5(%arg0: i32, %arg1: i32) -> i32 {
    %c0_i32 = arith.constant 0 : i32
    %c0_i32_0 = arith.constant 0 : i32
    return %c0_i32 : i32
  }
  func.func @transform_6(%arg0: i32, %arg1: i32) -> i32 {
    %c0_i32 = arith.constant 0 : i32
    %c0_i32_0 = arith.constant 0 : i32
    return %c0_i32 : i32
  }
  func.func @transform_7(%arg0: i32, %arg1: i32) -> i32 {
    %c0_i32 = arith.constant 0 : i32
    %c0_i32_0 = arith.constant 0 : i32
    return %c0_i32 : i32
  }
  func.func @transform_8(%arg0: i32, %arg1: i32) -> i32 {
    %c0_i32 = arith.constant 0 : i32
    %c0_i32_0 = arith.constant 0 : i32
    return %c0_i32 : i32
  }
  func.func @transform_9(%arg0: i32, %arg1: i32) -> i32 {
    %c0_i32 = arith.constant 0 : i32
    %c0_i32_0 = arith.constant 0 : i32
    return %c0_i32 : i32
  }
  func.func @transform_10(%arg0: i32, %arg1: i32) -> i32 {
    %c0_i32 = arith.constant 0 : i32
    %c0_i32_0 = arith.constant 0 : i32
    return %c0_i32 : i32
  }
  func.func @transform_11(%arg0: i32, %arg1: i32) -> i32 {
    %c0_i32 = arith.constant 0 : i32
    %c0_i32_0 = arith.constant 0 : i32
    return %c0_i32 : i32
  }
  func.func @transform_12(%arg0: i32, %arg1: i32) -> i32 {
    %c0_i32 = arith.constant 0 : i32
    %c0_i32_0 = arith.constant 0 : i32
    return %c0_i32 : i32
  }
  func.func @transform_13(%arg0: i32, %arg1: i32) -> (i32, i32, i32) {
    %c0_i32 = arith.constant 0 : i32
    %c0_i32_0 = arith.constant 0 : i32
    return %arg0, %arg1, %c0_i32 : i32, i32, i32
  }
}

</mosaic_0001>

<bundles_post_ra>
// kernel: tpu_custom_call.1
= control target key start
LH: loop header
LB: loop body
LE: loop exit
PB: predicated region body
PF: predicated region fallthrough
CT: control target
= control target key end

     0   :  { %s2147_s0 = inlined_call_operand.hbm [shape: f32[4,8,128], index: 0, kind: input, shape index: {}]   ;;  %s2148_s1 = inlined_call_operand.vmem [shape: f32[12], index: 1, kind: input, shape index: {}]   ;;  %s2149_s2 = inlined_call_operand.vmem [shape: f32[12], index: 2, kind: input, shape index: {}]   ;;  %s2150_s3 = inlined_call_operand.vmem [shape: f32[12], index: 3, kind: input, shape index: {}]   ;;  %s2151_s4 = inlined_call_operand.vmem [shape: f32[36], index: 4, kind: input, shape index: {}]   ;;  %s2152_s5 = inlined_call_operand.vmem [shape: f32[12], index: 5, kind: input, shape index: {}]   ;;  %s2153_s6 = inlined_call_operand.vmem [shape: f32[12], index: 6, kind: input, shape index: {}]   ;;  %s2154_s7 = inlined_call_operand.vmem [shape: f32[36], index: 7, kind: input, shape index: {}]   ;;  %s2155_s8 = inlined_call_operand.vmem [shape: f32[12], index: 8, kind: input, shape index: {}]   ;;  %s2156_s9 = inlined_call_operand.vmem [shape: f32[12], index: 9, kind: input, shape index: {}]   ;;  %s2157_s10 = inlined_call_operand.vmem [shape: f32[12], index: 10, kind: input, shape index: {}]   ;;  %s2158_s11 = inlined_call_operand.vmem [shape: f32[4], index: 11, kind: input, shape index: {}]   ;;  %s2159_s12 = inlined_call_operand.vmem [shape: f32[4], index: 12, kind: input, shape index: {}]   ;;  %s2160_s13 = inlined_call_operand.hbm [shape: f32[4,8,128], index: 13, kind: output, shape index: {}]  }
   0x1   :  { %2173 = sst [smem:[#allocation37_spill]] %s2147_s0 }
   0x2   :  { %2174 = sst [smem:[#allocation38_spill]] %s2148_s1 }
   0x3   :  { %2175 = sst [smem:[#allocation39_spill]] %s2149_s2 }
   0x4   :  { %2176 = sst [smem:[#allocation40_spill]] %s2150_s3 }
   0x5   :  { %2177 = sst [smem:[#allocation41_spill]] %s2151_s4 }
   0x6   :  { %2178 = sst [smem:[#allocation42_spill]] %s2152_s5 }
   0x7   :  { %2179 = sst [smem:[#allocation43_spill]] %s2153_s6 }
   0x8   :  { %2180 = sst [smem:[#allocation44_spill]] %s2154_s7 }
   0x9   :  { %2181 = sst [smem:[#allocation45_spill]] %s2155_s8 }
   0xa   :  { %2182 = sst [smem:[#allocation46_spill]] %s2156_s9 }
   0xb   :  { %2183 = sst [smem:[#allocation47_spill]] %s2157_s10 }
   0xc   :  { %2184 = sst [smem:[#allocation48_spill]] %s2158_s11 }
   0xd   :  { %2185 = sst [smem:[#allocation49_spill]] %s2159_s12 }
   0xe   :  { %18 = vsyncpa [#allocation3], 0 }
   0xf   :  { %20 = vsyncpa [#allocation3 + $0x1], 0 }
  0x10   :  { %21 = vsyncpa [#allocation5], 0 }
  0x11   :  { %22 = vsyncpa [#allocation8], 0 }
  0x12   :  { %23 = vsyncpa [#allocation11], 0 }
  0x13   :  { %24 = vsyncpa [#allocation14], 0 }
  0x14   :  { %25 = vsyncpa [#allocation17], 0 }
  0x15   :  { %26 = vsyncpa [#allocation20], 0 }
  0x16   :  { %27 = vsyncpa [#allocation23], 0 }
  0x17   :  { %28 = vsyncpa [#allocation4], 0 }
  0x18   :  { %30 = vsyncpa [#allocation4 + $0x1], 0  ;;  %s1663_s25 = smov 0   ;;  %s1665_s26 = smov 0  }
  0x19   :  { %s1667_s27 = smov 0   ;;  %s1669_s28 = smov 0  }
  0x1a   :  { %s1671_s29 = smov 0   ;;  %s1673_s30 = smov 0  }
  0x1b LB: > { %2186 = sst [smem:[#allocation34_spill]] %s1573_s29  ;;  %s2187_s2 = sld [smem:[#allocation39_spill]]  ;;  %s1577_s30 = sphi %s1673_s30, %s36_s30   ;;  %s1573_s29 = sphi %s1671_s29, %s2226_s29   ;;  %s1569_s28 = sphi %s1669_s28, %s2225_s28   ;;  %s1565_s27 = sphi %s1667_s27, %s2229_s27   ;;  %s1561_s26 = sphi %s1665_s26, %s2228_s26   ;;  %s1557_s25 = sphi %s1663_s25, %s2227_s25  }
  0x1c   : > { %s2161_s17 = sadd.s32 4294967295, %s1577_s30   ;;  %p1019_p0 = scmp.ge.s32.totalorder %s1577_s30, 1 }
  0x1d   : > { %p1700_p1 = scmp.eq.s32.totalorder %s2161_s17, 0  ;;  %p361_p2 = scmp.lt.s32.totalorder %s1577_s30, 5 }
  0x1e   : > { %s2190_s4 = sld [smem:[#allocation41_spill]]  ;;  %s2191_s6 = sld [smem:[#allocation43_spill]] }
  0x1f   : > { %s2188_s18 = scalar_select %p1700_p1, 1, 0 }
  0x20   : > { %p1705_p3 = pnand %p1019_p0, %p361_p2  ;;  %s2193_s8 = sld [smem:[#allocation45_spill]] }
  0x21   : > { %s385_s16 = sshll.u32 %s2187_s2, 4  ;;  %s386_s16 = int_to_ptr.vmem [resolvable:$true] %s385_s16 }
  0x22   : > { %s2189_s19 = scalar_select %p1705_p3, 1, 0 }
  0x23   : > { %p1106_p4 = pneg %p1705_p3  ;;  %s1257_s21 = scalar_lea.vmem %s386_s16, 16 }
  0x24   : > { %s407_s22 = sshll.u32 %s2190_s4, 4  ;;  %s429_s14 = sshll.u32 %s2191_s6, 4  ;;  %s408_s22 = int_to_ptr.vmem [resolvable:$true] %s407_s22  ;;  %s1723_s14 = int_to_ptr.vmem [resolvable:$true] %s429_s14 }
  0x25   : > { %p1719_p5 = pnand %p1106_p4, %p1700_p1  ;;  %p1258_p6 = scmp.ne.s32.totalorder %s386_s16, %s1257_s21 }
  0x26   : > { %s451_s20 = sshll.u32 %s2193_s8, 4  ;;  %p1265_p10 = scmp.lt.s32.totalorder %s386_s16, %s386_s16  ;;  %s1728_s20 = int_to_ptr.vmem [resolvable:$true] %s451_s20 }
  0x27   : > { %p1732_p7 = pneg %p1719_p5  ;;  %p1266_p11 = scmp.lt.s32.totalorder %s1257_s21, %s1257_s21 }
  0x29   : > { %p1260_p8 = pnand %p1732_p7, %p1258_p6  ;;  %p1267_p12 = por %p1266_p11, %p1265_p10 }
  0x2b   : > { %p1261_p9 = pneg %p1260_p8 }
  0x2d   : > { %p1268_p13 = pnand %p1267_p12, %p1261_p9 }
  0x2f   : > { %1271 = shalt.err (!%p1268_p13)
}
  0x30   : > { %s1579_s2 = smov [#allocation7]   ;;  %s1272_s17 = scalar_lea.vmem %s408_s22, 16 }
  0x31   : > { %1112 = dma.vmem_to_smem (!%p1719_p5), %s386_s16, 16, %s1579_s2, [#allocation8]  }
  0x32   : > { %p1273_p0 = scmp.ne.s32.totalorder %s408_s22, %s1272_s17  ;;  %p1280_p3 = scmp.lt.s32.totalorder %s408_s22, %s408_s22 }
  0x33   : > { %p1281_p1 = scmp.lt.s32.totalorder %s1272_s17, %s1272_s17 }
  0x34   : > { %p1275_p2 = pnand %p1273_p0, %p1732_p7 }
  0x35   : > { %p1282_p6 = por %p1281_p1, %p1280_p3 }
  0x36   : > { %p1276_p4 = pneg %p1275_p2 }
  0x38   : > { %p1283_p8 = pnand %p1282_p6, %p1276_p4 }
  0x3a   : > { %1286 = shalt.err (!%p1283_p8)
}
  0x3b   : > { %s1580_s24 = smov [#allocation10]   ;;  %s1287_s21 = scalar_lea.vmem %s1723_s14, 16 }
  0x3c   : > { %1118 = dma.vmem_to_smem (!%p1719_p5), %s408_s22, 16, %s1580_s24, [#allocation11]  }
  0x3d   : > { %p1288_p9 = scmp.ne.s32.totalorder %s1723_s14, %s1287_s21  ;;  %p1295_p12 = scmp.lt.s32.totalorder %s1723_s14, %s1723_s14 }
  0x3e   : > { %p1296_p13 = scmp.lt.s32.totalorder %s1287_s21, %s1287_s21 }
  0x3f   : > { %p1290_p10 = pnand %p1288_p9, %p1732_p7 }
  0x40   : > { %p1297_p0 = por %p1296_p13, %p1295_p12 }
  0x41   : > { %p1291_p11 = pneg %p1290_p10 }
  0x43   : > { %p1298_p1 = pnand %p1297_p0, %p1291_p11 }
  0x45   : > { %1301 = shalt.err (!%p1298_p1)
}
  0x46   : > { %s1581_s16 = smov [#allocation13]   ;;  %s1302_s22 = scalar_lea.vmem %s1728_s20, 16 }
  0x47   : > { %1124 = dma.vmem_to_smem (!%p1719_p5), %s1723_s14, 16, %s1581_s16, [#allocation14]  }
  0x48   : > { %p1303_p3 = scmp.ne.s32.totalorder %s1728_s20, %s1302_s22  ;;  %p1310_p6 = scmp.lt.s32.totalorder %s1728_s20, %s1728_s20 }
  0x49   : > { %p1311_p8 = scmp.lt.s32.totalorder %s1302_s22, %s1302_s22 }
  0x4a   : > { %p1305_p2 = pnand %p1303_p3, %p1732_p7 }
  0x4b   : > { %p1312_p9 = por %p1311_p8, %p1310_p6 }
  0x4c   : > { %p1306_p4 = pneg %p1305_p2 }
  0x4e   : > { %p1313_p10 = pnand %p1312_p9, %p1306_p4 }
  0x50   : > { %1316 = shalt.err (!%p1313_p10)
}
  0x51   : > { %s1582_s2 = smov [#allocation16]   ;;  %s2195_s10 = sld [smem:[#allocation47_spill]] }
  0x52   : > { %1130 = dma.vmem_to_smem (!%p1719_p5), %s1728_s20, 16, %s1582_s2, [#allocation17]  }
  0x57   : > { %s473_s14 = sshll.u32 %s2195_s10, 4  ;;  %s474_s14 = int_to_ptr.vmem [resolvable:$true] %s473_s14 }
  0x58   : > { %s1317_s21 = scalar_lea.vmem %s474_s14, 16  ;;  %p1325_p0 = scmp.lt.s32.totalorder %s474_s14, %s474_s14 }
  0x59   : > { %p1318_p11 = scmp.ne.s32.totalorder %s474_s14, %s1317_s21  ;;  %p1326_p1 = scmp.lt.s32.totalorder %s1317_s21, %s1317_s21 }
  0x5b   : > { %p1320_p12 = pnand %p1318_p11, %p1732_p7  ;;  %p1327_p3 = por %p1326_p1, %p1325_p0 }
  0x5d   : > { %p1321_p13 = pneg %p1320_p12 }
  0x5f   : > { %p1328_p2 = pnand %p1327_p3, %p1321_p13 }
  0x61   : > { %1331 = shalt.err (!%p1328_p2)
}
  0x62   : > { %s1583_s16 = smov [#allocation19]   ;;  %s2196_s1 = sld [smem:[#allocation38_spill]] }
  0x63   : > { %1136 = dma.vmem_to_smem (!%p1719_p5), %s474_s14, 16, %s1583_s16, [#allocation20]  }
  0x68   : > { %s374_s2 = sshll.u32 %s2196_s1, 4  ;;  %s375_s2 = int_to_ptr.vmem [resolvable:$true] %s374_s2 }
  0x69   : > { %s1332_s17 = scalar_lea.vmem %s375_s2, 16  ;;  %p1340_p9 = scmp.lt.s32.totalorder %s375_s2, %s375_s2 }
  0x6a   : > { %p1333_p4 = scmp.ne.s32.totalorder %s375_s2, %s1332_s17  ;;  %p1341_p10 = scmp.lt.s32.totalorder %s1332_s17, %s1332_s17 }
  0x6c   : > { %p1335_p6 = pnand %p1333_p4, %p1732_p7  ;;  %p1342_p11 = por %p1341_p10, %p1340_p9 }
  0x6e   : > { %p1336_p8 = pneg %p1335_p6 }
  0x70   : > { %p1343_p12 = pnand %p1342_p11, %p1336_p8 }
  0x72   : > { %1346 = shalt.err (!%p1343_p12)
}
  0x73   : > { %s1584_s24 = smov [#allocation6]   ;;  %s2197_s3 = sld [smem:[#allocation40_spill]] }
  0x74   : > { %1109 = dma.vmem_to_smem (!%p1719_p5), %s375_s2, 16, %s1584_s24, [#allocation5]  }
  0x75   : > { %s2198_s5 = sld [smem:[#allocation42_spill]] }
  0x79   : > { %s396_s16 = sshll.u32 %s2197_s3, 4  ;;  %s397_s16 = int_to_ptr.vmem [resolvable:$true] %s396_s16 }
  0x7a   : > { %s1347_s4 = scalar_lea.vmem %s397_s16, 16  ;;  %p1355_p3 = scmp.lt.s32.totalorder %s397_s16, %s397_s16 }
  0x7b   : > { %s418_s1 = sshll.u32 %s2198_s5, 4  ;;  %p1348_p13 = scmp.ne.s32.totalorder %s397_s16, %s1347_s4  ;;  %s419_s1 = int_to_ptr.vmem [resolvable:$true] %s418_s1 }
  0x7c   : > { %p1356_p2 = scmp.lt.s32.totalorder %s1347_s4, %s1347_s4 }
  0x7d   : > { %p1350_p0 = pnand %p1348_p13, %p1732_p7 }
  0x7e   : > { %p1357_p4 = por %p1356_p2, %p1355_p3 }
  0x7f   : > { %p1351_p1 = pneg %p1350_p0 }
  0x81   : > { %p1358_p6 = pnand %p1357_p4, %p1351_p1 }
  0x83   : > { %1361 = shalt.err (!%p1358_p6)
}
  0x84   : > { %s1585_s2 = smov [#allocation9]   ;;  %s1362_s17 = scalar_lea.vmem %s419_s1, 16 }
  0x85   : > { %1115 = dma.vmem_to_smem (!%p1719_p5), %s397_s16, 16, %s1585_s2, [#allocation8]  }
  0x86   : > { %p1363_p8 = scmp.ne.s32.totalorder %s419_s1, %s1362_s17  ;;  %p1370_p11 = scmp.lt.s32.totalorder %s419_s1, %s419_s1 }
  0x87   : > { %p1371_p12 = scmp.lt.s32.totalorder %s1362_s17, %s1362_s17 }
  0x88   : > { %p1365_p9 = pnand %p1363_p8, %p1732_p7 }
  0x89   : > { %p1372_p13 = por %p1371_p12, %p1370_p11 }
  0x8a   : > { %p1366_p10 = pneg %p1365_p9 }
  0x8c   : > { %p1373_p0 = pnand %p1372_p13, %p1366_p10 }
  0x8e   : > { %1376 = shalt.err (!%p1373_p0)
}
  0x8f   : > { %s1586_s4 = smov [#allocation12]   ;;  %s2199_s7 = sld [smem:[#allocation44_spill]] }
  0x90   : > { %1121 = dma.vmem_to_smem (!%p1719_p5), %s419_s1, 16, %s1586_s4, [#allocation11]  }
  0x91   : > { %s2200_s9 = sld [smem:[#allocation46_spill]] }
  0x95   : > { %s440_s21 = sshll.u32 %s2199_s7, 4  ;;  %s441_s21 = int_to_ptr.vmem [resolvable:$true] %s440_s21 }
  0x96   : > { %s1377_s2 = scalar_lea.vmem %s441_s21, 16  ;;  %p1385_p4 = scmp.lt.s32.totalorder %s441_s21, %s441_s21 }
  0x97   : > { %s462_s22 = sshll.u32 %s2200_s9, 4  ;;  %p1378_p1 = scmp.ne.s32.totalorder %s441_s21, %s1377_s2  ;;  %s463_s22 = int_to_ptr.vmem [resolvable:$true] %s462_s22 }
  0x98   : > { %p1386_p6 = scmp.lt.s32.totalorder %s1377_s2, %s1377_s2 }
  0x99   : > { %p1380_p3 = pnand %p1378_p1, %p1732_p7 }
  0x9a   : > { %p1387_p8 = por %p1386_p6, %p1385_p4 }
  0x9b   : > { %p1381_p2 = pneg %p1380_p3 }
  0x9d   : > { %p1388_p9 = pnand %p1387_p8, %p1381_p2 }
  0x9f   : > { %1391 = shalt.err (!%p1388_p9)
}
  0xa0   : > { %s1587_s1 = smov [#allocation15]   ;;  %s1392_s17 = scalar_lea.vmem %s463_s22, 16 }
  0xa1   : > { %1127 = dma.vmem_to_smem (!%p1719_p5), %s441_s21, 16, %s1587_s1, [#allocation14]  }
  0xa2   : > { %p1393_p10 = scmp.ne.s32.totalorder %s463_s22, %s1392_s17  ;;  %p1400_p13 = scmp.lt.s32.totalorder %s463_s22, %s463_s22 }
  0xa3   : > { %p1401_p0 = scmp.lt.s32.totalorder %s1392_s17, %s1392_s17 }
  0xa4   : > { %p1395_p11 = pnand %p1393_p10, %p1732_p7 }
  0xa5   : > { %p1402_p1 = por %p1401_p0, %p1400_p13 }
  0xa6   : > { %p1396_p12 = pneg %p1395_p11 }
  0xa8   : > { %p1403_p3 = pnand %p1402_p1, %p1396_p12 }
  0xaa   : > { %1406 = shalt.err (!%p1403_p3)
}
  0xab   : > { %s1588_s4 = smov [#allocation18]   ;;  %s2201_s11 = sld [smem:[#allocation48_spill]] }
  0xac   : > { %1133 = dma.vmem_to_smem (!%p1719_p5), %s463_s22, 16, %s1588_s4, [#allocation17]  }
  0xad   : > { %s2202_s12 = sld [smem:[#allocation49_spill]] }
  0xb1   : > { %s484_s21 = sshll.u32 %s2201_s11, 4  ;;  %s485_s21 = int_to_ptr.vmem [resolvable:$true] %s484_s21 }
  0xb2   : > { %s1407_s1 = scalar_lea.vmem %s485_s21, 16  ;;  %p1415_p8 = scmp.lt.s32.totalorder %s485_s21, %s485_s21 }
  0xb3   : > { %s495_s2 = sshll.u32 %s2202_s12, 4  ;;  %p1408_p2 = scmp.ne.s32.totalorder %s485_s21, %s1407_s1  ;;  %s496_s2 = int_to_ptr.vmem [resolvable:$true] %s495_s2 }
  0xb4   : > { %p1416_p9 = scmp.lt.s32.totalorder %s1407_s1, %s1407_s1 }
  0xb5   : > { %p1410_p4 = pnand %p1408_p2, %p1732_p7 }
  0xb6   : > { %p1417_p10 = por %p1416_p9, %p1415_p8 }
  0xb7   : > { %p1411_p6 = pneg %p1410_p4 }
  0xb9   : > { %p1418_p11 = pnand %p1417_p10, %p1411_p6 }
  0xbb   : > { %1421 = shalt.err (!%p1418_p11)
}
  0xbc   : > { %s1589_s22 = smov [#allocation21]   ;;  %s1422_s17 = scalar_lea.vmem %s496_s2, 16 }
  0xbd   : > { %1139 = dma.vmem_to_smem (!%p1719_p5), %s485_s21, 16, %s1589_s22, [#allocation20]  }
  0xbe   : > { %p1423_p12 = scmp.ne.s32.totalorder %s496_s2, %s1422_s17  ;;  %p1430_p1 = scmp.lt.s32.totalorder %s496_s2, %s496_s2 }
  0xbf   : > { %p1431_p3 = scmp.lt.s32.totalorder %s1422_s17, %s1422_s17 }
  0xc0   : > { %p1425_p13 = pnand %p1423_p12, %p1732_p7 }
  0xc1   : > { %p1432_p2 = por %p1431_p3, %p1430_p1 }
  0xc2   : > { %p1426_p0 = pneg %p1425_p13 }
  0xc4   : > { %p1433_p4 = pnand %p1432_p2, %p1426_p0 }
  0xc6   : > { %1436 = shalt.err (!%p1433_p4)
}
  0xc7   : > { %s1590_s4 = smov [#allocation22]   ;;  %s1018_s23 = sadd.s32 4294967294, %s1577_s30  }
  0xc8   : > { %1142 = dma.vmem_to_smem (!%p1719_p5), %s496_s2, 16, %s1590_s4, [#allocation23]  }
  0xc9   : > { %s48_s24 = sadd.s32 1, %s1573_s29  ;;  %s57_s14 = sadd.s32 1, %s1565_s27 }
  0xca   : > { %p50_p7 = scmp.ge.s32.totalorder %s48_s24, 4  ;;  %p64_p6 = scmp.ne.s32.totalorder %s1565_s27, %s1561_s26 }
  0xcb   : > { %p65_p8 = scmp.eq.s32.totalorder %s1577_s30, 0  ;;  %p70_p10 = scmp.ne.s32.totalorder %s1561_s26, %s1557_s25 }
  0xcc   : > { %s2231_s24 = smov (%p50_p7, %s48_s24), 0  ;;  %s2205_s16 = sadd.s32 4294967295, %s1577_s30  }
  0xcd   : > { %2203 = sst [smem:[#allocation35_spill]] %s2231_s24  ;;  %p1826_p9 = por %p65_p8, %p64_p6 }
  0xce   : > { %s52_s21 = ssub.s32 %s1573_s29, %s2231_s24  ;;  %p348_p5 = scmp.eq.s32.totalorder %s2205_s16, 3 }
  0xcf   : > { %p55_p11 = scmp.eq.s32.totalorder %s52_s21, 0  ;;  %p2206_p12 = scmp.ne.s32.totalorder %s2188_s18, 0 }
  0xd0   : > { %p1842_p0 = por %p348_p5, %p64_p6  ;;  %p354_p1 = scmp.eq.s32.totalorder %s1018_s23, 3 }
  0xd1   : > { %p1838_p13 = por %p2206_p12, %p70_p10  ;;  %p1163_p2 = scmp.lt.s32.totalorder %s1577_s30, 4 }
  0xd2   : > { %s2208_s2 = scalar_select %p1842_p0, 1, 0 }
  0xd3   : > { %s1847_s1 = scalar_select %p55_p11, %s1565_s27, %s57_s14  }
  0xd4   : > { %p1849_p3 = por %p354_p1, %p70_p10  ;;  %s506_s17 = sand.u32 1, %s1565_s27  }
  0xd5   : > { %2209 = sst [smem:[#allocation36_spill]] %s1847_s1  ;;  %s1034_s4 = sshll.u32 %s1573_s29, 7 }
  0xd6   : > { %s2210_s22 = scalar_select %p1849_p3, 1, 0 }
  0xd7   : > { %s1033_s21 = sshll.u32 %s506_s17, 3  ;;  %s2211_s0 = sld [smem:[#allocation37_spill]] }
  0xd8   : > { %s510_s23 = scalar_lea.vmem [#allocation2], %s1033_s21  ;;  %p1863_p4 = pnand %p1163_p2, %p1826_p9 }
  0xd9   : > { %s518_s14 = sshll.u32 %s510_s23, 4  ;;  %s507_s7 = scalar_lea.sflag [#allocation3], %s506_s17  ;;  %s1867_s14 = int_to_ptr.vmem [resolvable:$true] %s518_s14 }
  0xda   : > { %p1439_p6 = pneg %p1863_p4 }
  0xdd   : > { %s1859_s5 = scalar_lea.hbm %s2211_s0, %s1034_s4  ;;  %s1442_s15 = scalar_lea.hbm %s2211_s0, 512 }
  0xde   : > { %s1437_s8 = scalar_lea.hbm %s1859_s5, 128  ;;  %p1443_p9 = scmp.lt.u32.totalorder %s1859_s5, %s2211_s0 }
  0xdf   : > { %p1438_p7 = scmp.ne.s32.totalorder %s1859_s5, %s1437_s8  ;;  %p1444_p5 = scmp.lt.u32.totalorder %s1442_s15, %s1437_s8 }
  0xe0   : > { %p1446_p12 = scmp.lt.u32.totalorder %s1437_s8, %s1859_s5 }
  0xe1   : > { %p1440_p8 = pnand %p1439_p6, %p1438_p7  ;;  %p1445_p11 = por %p1444_p5, %p1443_p9 }
  0xe3   : > { %p1441_p10 = pneg %p1440_p8  ;;  %p1447_p1 = por %p1446_p12, %p1445_p11 }
  0xe5   : > { %p1448_p2 = pnand %p1447_p1, %p1441_p10 }
  0xe7   : > { %1451 = shalt.err (!%p1448_p2)
}
  0xe8   : > { %s1452_s17 = scalar_lea.vmem %s1867_s14, 128  ;;  %s1591_s23 = smov [#allocation2]  }
  0xe9   : > { %p1453_p7 = scmp.ne.s32.totalorder %s1867_s14, %s1452_s17  ;;  %s1457_s3 = sshll.u32 %s1591_s23, 4  ;;  %s1458_s3 = int_to_ptr.vmem [resolvable:$false] %s1457_s3 }
  0xea   : > { %s1459_s4 = scalar_lea.vmem %s1458_s3, 256  ;;  %p1460_p0 = scmp.lt.s32.totalorder %s1867_s14, %s1458_s3 }
  0xeb   : > { %p1455_p8 = pnand %p1453_p7, %p1439_p6  ;;  %p1461_p9 = scmp.lt.s32.totalorder %s1459_s4, %s1452_s17 }
  0xed   : > { %p1456_p3 = pneg %p1455_p8  ;;  %p1462_p5 = por %p1461_p9, %p1460_p0 }
  0xef   : > { %p1463_p11 = pnand %p1462_p5, %p1456_p3 }
  0xf1   : > { %1466 = shalt.err (!%p1463_p11)
}
  0xf2   : > { %1146 = dma.hbm_to_vmem [thread:$0]  (!%p1863_p4), %s1859_s5, 128, %s1867_s14, %s507_s7  }
  0xf3   : > { %p2213_p10 = scmp.ne.s32.totalorder %s2189_s19, 0 }
  0xf4   : > { %s1897_s8 = sand.u32 (!%p2213_p10), 1, %s1561_s26  }
  0xf5   : > { %527 = sbr.rel (%p2213_p10) target bundleno = 385 (0x181), region = 72  ;;  %s2166_s15 = sshll.u32 (!%p2213_p10), %s1897_s8, 3 }
  0xf6   : > { %s530_s21 = scalar_lea.sflag (!%p2213_p10), [#allocation3], %s1897_s8  ;;  %s533_s16 = scalar_lea.vmem (!%p2213_p10), [#allocation2], %s2166_s15 }
  0xfc   : > { %1520 = dma.done.wait (%p1838_p13), %s530_s21, 128  }
  0xfd   : > { %1522 = vsyncadd (%p1838_p13), %s530_s21, 4294967168  ;;  %p2214_p0 = scmp.ne.s32.totalorder %s2188_s18, 0 }
  0xff   : > { %1524 = dma.done.wait (%p2214_p0), [#allocation5], 16  }
 0x100   : > { %1526 = vsyncadd (%p2214_p0), [#allocation5], 4294967280 }
 0x101   : > { %1528 = dma.done.wait (%p2214_p0), [#allocation8], 32  }
 0x102   : > { %1530 = vsyncadd (%p2214_p0), [#allocation8], 4294967264 }
 0x103   : > { %1532 = dma.done.wait (%p2214_p0), [#allocation11], 32  }
 0x104   : > { %1534 = vsyncadd (%p2214_p0), [#allocation11], 4294967264 }
 0x105   : > { %1536 = dma.done.wait (%p2214_p0), [#allocation14], 32  }
 0x106   : > { %1538 = vsyncadd (%p2214_p0), [#allocation14], 4294967264 }
 0x107   : > { %1540 = dma.done.wait (%p2214_p0), [#allocation17], 32  }
 0x108   : > { %1542 = vsyncadd (%p2214_p0), [#allocation17], 4294967264 }
 0x109   : > { %1544 = dma.done.wait (%p2214_p0), [#allocation20], 32  }
 0x10a   : > { %1546 = vsyncadd (%p2214_p0), [#allocation20], 4294967264 }
 0x10b   : > { %1548 = dma.done.wait (%p2214_p0), [#allocation23], 16  }
 0x10c   : > { %1550 = vsyncadd (%p2214_p0), [#allocation23], 4294967280 }
 0x10d   : > { %586 = sfence }
 0x10e   : > { %s1936_s5 = smul.u32 3, %s1569_s28  ;;  %v625_v0 = vld [vmem:[%s533_s16] sm:$0xff]  ;;  %p2222_p3 = scmp.ne.s32.totalorder %s2208_s2, 0 }
 0x10f   : > { %s1951_s3 = smul.u32 9, %s1569_s28 }
 0x110   : > { %s627_s6 = sld [smem:[#allocation6 + %s1936_s5]]  ;;  %s1941_s19 = sadd.s32 1, %s1936_s5 }
 0x111   : > { %s630_s7 = sld [smem:[#allocation9 + %s1936_s5]]  ;;  %s1946_s14 = sadd.s32 2, %s1936_s5 }
 0x112   : > { %s639_s20 = sld [smem:[#allocation6 + %s1941_s19]]  ;;  %s2167_s16 = sadd.s32 1, %s1951_s3 }
 0x113   : > { %s642_s18 = sld [smem:[#allocation9 + %s1941_s19]]  ;;  %s688_s15 = sadd.s32 4, %s1951_s3 }
 0x114   : > { %s651_s17 = sld [smem:[#allocation6 + %s1946_s14]]  ;;  %s710_s0 = sadd.s32 7, %s1951_s3 }
 0x115   : > { %s654_s23 = sld [smem:[#allocation9 + %s1946_s14]]  ;;  %s2172_s11 = sadd.s32 8, %s1951_s3 }
 0x116   : > { %v628_v1 = vstv %s627_s6  ;;  %s1954_s4 = sld [smem:[#allocation7 + %s1936_s5]]  ;;  %s2215_s24 = sadd.s32 2, %s1951_s3 }
 0x117   : > { %v631_v2 = vstv %s630_s7  ;;  %v629_v3 = vmul.f32 %v628_v1, %v625_v0  ;;  %s1957_s21 = sld [smem:[#allocation7 + %s1941_s19]] }
 0x118   : > { %v640_v4 = vstv %s639_s20  ;;  %s1961_s6 = sld [smem:[#allocation7 + %s1946_s14]]  ;;  %s693_s20 = sadd.s32 5, %s1951_s3 }
 0x119   : > { %v643_v5 = vstv %s642_s18  ;;  %v632_v6 = vadd.f32 %v631_v2, %v629_v3  ;;  %v641_v7 = vmul.f32 %v640_v4, %v625_v0  ;;  %s1964_s7 = sld [smem:[#allocation10 + %s1951_s3]]  ;;  %s2170_s18 = sadd.s32 3, %s1951_s3 }
 0x11a   : > { %v652_v8 = vstv %s651_s17  ;;  %s1970_s17 = sld [smem:[#allocation10 + %s2167_s16]] }
 0x11b   : > { %v655_v9 = vstv %s654_s23  ;;  %1237 = vtanh.f32 %v632_v6  ;;  %v644_v10 = vadd.f32 %v643_v5, %v641_v7  ;;  %v653_v11 = vmul.f32 %v652_v8, %v625_v0  ;;  %s2171_s23 = sadd.s32 6, %s1951_s3  ;;  %s685_s9 = sld [smem:[#allocation10 + %s2170_s18]] }
 0x11c   : > { %s1980_s10 = sld [smem:[#allocation10 + %s2171_s23]]  ;;  %v635_v13 = vstv %s1954_s4 }
 0x11d   : > { %1239 = vtanh.f32 %v644_v10  ;;  %v656_v12 = vadd.f32 %v655_v9, %v653_v11  ;;  %s1985_s12 = sld [smem:[#allocation10 + %s688_s15]]  ;;  %v647_v15 = vstv %s1957_s21  ;;  %s2216_s21 = sadd.s32 1, %s1951_s3 }
 0x11e   : > { %s1989_s16 = sld [smem:[#allocation10 + %s710_s0]]  ;;  %v659_v18 = vstv %s1961_s6 }
 0x11f   : > { %1241 = vtanh.f32 %v656_v12  ;;  %s1993_s29 = sld [smem:[#allocation10 + %s2215_s24]]  ;;  %v664_v19 = vstv %s1964_s7  ;;  %s2218_s7 = sadd.s32 3, %s1951_s3 }
 0x120   : > { %s1998_s18 = sld [smem:[#allocation10 + %s693_s20]]  ;;  %v668_v25 = vstv %s1970_s17  ;;  %s2219_s17 = sadd.s32 6, %s1951_s3 }
 0x121   : > { %s2002_s23 = sld [smem:[#allocation10 + %s2172_s11]]  ;;  %v686_v20 = vstv %s685_s9 }
 0x122   : > { %s2008_s24 = sld [smem:[#allocation13 + %s1936_s5]]  ;;  %v708_v23 = vstv %s1980_s10 }
 0x123   : > { %s2011_s4 = sld [smem:[#allocation13 + %s1941_s19]]  ;;  %v690_v26 = vstv %s1985_s12 }
 0x124   : > { %s2015_s11 = sld [smem:[#allocation13 + %s1946_s14]]  ;;  %v712_v27 = vstv %s1989_s16  ;;  %s2217_s16 = sadd.s32 2, %s1951_s3 }
 0x125   : > { %v1238_v14 = vpop.eup %1237  ;;  %v673_v32 = vstv %s1993_s29  ;;  %s679_s9 = sld [smem:[#allocation12 + %s1936_s5]] }
 0x126   : > { %v636_v16 = vmul.f32 %v1238_v14, %v635_v13  ;;  %v695_v33 = vstv %s1998_s18  ;;  %s701_s10 = sld [smem:[#allocation12 + %s1941_s19]] }
 0x127   : > { %v1240_v17 = vpop.eup %1239  ;;  %v717_v35 = vstv %s2002_s23  ;;  %s723_s12 = sld [smem:[#allocation12 + %s1946_s14]] }
 0x128   : > { %v637_v21 = vadd.f32 %v636_v16, %v632_v6  ;;  %v648_v22 = vmul.f32 %v1240_v17, %v647_v15  ;;  %v677_v44 = vstv %s2008_s24  ;;  %s2030_s29 = sld [smem:[#allocation15 + %s1951_s3]] }
 0x129   : > { %v1242_v24 = vpop.eup %1241  ;;  %v699_v45 = vstv %s2011_s4  ;;  %s2038_s6 = sld [smem:[#allocation15 + %s2217_s16]]  ;;  %s2220_s16 = sadd.s32 8, %s1951_s3 }
 0x12a   : > { %v649_v28 = vadd.f32 %v648_v22, %v644_v10  ;;  %v660_v29 = vmul.f32 %v1242_v24, %v659_v18  ;;  %v665_v30 = vmul.f32 %v664_v19, %v637_v21  ;;  %v687_v31 = vmul.f32 %v686_v20, %v637_v21  ;;  %s2042_s18 = sld [smem:[#allocation15 + %s2218_s7]] }
 0x12b   : > { %v709_v34 = vmul.f32 %v708_v23, %v637_v21  ;;  %v721_v50 = vstv %s2015_s11  ;;  %s2034_s11 = sld [smem:[#allocation15 + %s2216_s21]]  ;;  %v681_v55 = vstv %s679_s9 }
 0x12c   : > { %v661_v36 = vadd.f32 %v660_v29, %v656_v12  ;;  %v669_v37 = vmul.f32 %v668_v25, %v649_v28  ;;  %v691_v38 = vmul.f32 %v690_v26, %v649_v28  ;;  %v713_v39 = vmul.f32 %v712_v27, %v649_v28  ;;  %s2046_s23 = sld [smem:[#allocation15 + %s2219_s17]] }
 0x12d   : > { %s2050_s24 = sld [smem:[#allocation15 + %s688_s15]]  ;;  %v703_v56 = vstv %s701_s10  ;;  %v725_v58 = vstv %s723_s12 }
 0x12e   : > { %v670_v40 = vadd.f32 %v669_v37, %v665_v30  ;;  %v674_v41 = vmul.f32 %v673_v32, %v661_v36  ;;  %v692_v42 = vadd.f32 %v691_v38, %v687_v31  ;;  %v696_v43 = vmul.f32 %v695_v33, %v661_v36  ;;  %s2054_s4 = sld [smem:[#allocation15 + %s710_s0]] }
 0x12f   : > { %v714_v46 = vadd.f32 %v713_v39, %v709_v34  ;;  %v718_v47 = vmul.f32 %v717_v35, %v661_v36  ;;  %s2058_s21 = sld [smem:[#allocation15 + %s693_s20]]  ;;  %v729_v61 = vstv %s2030_s29  ;;  %v736_v8 = vstv %s2038_s6 }
 0x130   : > { %v675_v48 = vadd.f32 %v674_v41, %v670_v40  ;;  %v697_v49 = vadd.f32 %v696_v43, %v692_v42  ;;  %s2062_s1 = sld [smem:[#allocation15 + %s2220_s16]]  ;;  %v748_v1 = vstv %s2042_s18 }
 0x131   : > { %v719_v51 = vadd.f32 %v718_v47, %v714_v46  ;;  %s2065_s15 = sld [smem:[#allocation18 + %s1936_s5]]  ;;  %v732_v0 = vstv %s2034_s11 }
 0x132   : > { %v678_v52 = vadd.f32 %v677_v44, %v675_v48  ;;  %v700_v53 = vadd.f32 %v699_v45, %v697_v49  ;;  %s2069_s0 = sld [smem:[#allocation18 + %s1941_s19]]  ;;  %v767_v2 = vstv %s2046_s23 }
 0x133   : > { %v722_v54 = vadd.f32 %v721_v50, %v719_v51  ;;  %s2072_s3 = sld [smem:[#allocation18 + %s1946_s14]]  ;;  %v751_v5 = vstv %s2050_s24  ;;  %s806_s24 = scalar_lea.sflag [#allocation4], %s1897_s8 }
 0x134   : > { %1243 = vtanh.f32 %v678_v52  ;;  %v770_v6 = vstv %s2054_s4  ;;  %s761_s20 = sld [smem:[#allocation16 + %s1941_s19]] }
 0x135   : > { %1245 = vtanh.f32 %v700_v53  ;;  %v755_v9 = vstv %s2058_s21  ;;  %s780_s9 = sld [smem:[#allocation16 + %s1946_s14]] }
 0x136   : > { %1247 = vtanh.f32 %v722_v54  ;;  %v774_v10 = vstv %s2062_s1  ;;  %s742_s1 = sld [smem:[#allocation16 + %s1936_s5]] }
 0x137   : > { %v740_v24 = vstv %s2065_s15  ;;  %s785_s10 = sld [smem:[#allocation19 + %s1936_s5]] }
 0x138   : > { %v759_v25 = vstv %s2069_s0  ;;  %s788_s12 = sld [smem:[#allocation19 + %s1941_s19]]  ;;  %s1051_s19 = sshll.u32 %s1569_s28, 7 }
 0x139   : > { %v778_v26 = vstv %s2072_s3  ;;  %s792_s29 = sld [smem:[#allocation19 + %s1946_s14]]  ;;  %s2221_s14 = sshll.u32 %s1897_s8, 3 }
 0x13a   : > { %v763_v34 = vstv %s761_s20  ;;  %s796_s11 = sld [smem:[#allocation22 + %s1569_s28]]  ;;  %s624_s6 = scalar_lea.vmem [#allocation24], %s2221_s14 }
 0x13b   : > { %v782_v36 = vstv %s780_s9  ;;  %s799_s5 = sld [smem:[#allocation21 + %s1569_s28]]  ;;  %s820_s7 = sshll.u32 %s624_s6, 4  ;;  %s2101_s7 = int_to_ptr.vmem [resolvable:$true] %s820_s7 }
 0x13c   : > { %v744_v33 = vstv %s742_s1  ;;  %s2099_s23 = scalar_lea.hbm %s2160_s13, %s1051_s19  ;;  %s1467_s4 = scalar_lea.vmem %s2101_s7, 128 }
 0x13d   : > { %v786_v41 = vstv %s785_s10  ;;  %p1468_p13 = scmp.ne.s32.totalorder %s2101_s7, %s1467_s4  ;;  %s1592_s28 = smov [#allocation24]  }
 0x13e   : > { %v1244_v57 = vpop.eup %1243  ;;  %v789_v44 = vstv %s788_s12  ;;  %s1471_s21 = sshll.u32 %s1592_s28, 4  ;;  %s1472_s21 = int_to_ptr.vmem [resolvable:$false] %s1471_s21 }
 0x13f   : > { %v1246_v59 = vpop.eup %1245  ;;  %v682_v60 = vmul.f32 %v1244_v57, %v681_v55  ;;  %v793_v46 = vstv %s792_s29  ;;  %p1469_p4 = pnand %p1468_p13, %p2222_p3  ;;  %s1473_s16 = scalar_lea.vmem %s1472_s21, 256 }
 0x140   : > { %v1248_v62 = vpop.eup %1247  ;;  %v704_v63 = vmul.f32 %v1246_v59, %v703_v56  ;;  %p1474_p12 = scmp.lt.s32.totalorder %s2101_s7, %s1472_s21  ;;  %p1475_p1 = scmp.lt.s32.totalorder %s1473_s16, %s1467_s4 }
 0x141   : > { %v683_v3 = vadd.f32 %v682_v60, %v678_v52  ;;  %v726_v4 = vmul.f32 %v1248_v62, %v725_v58  ;;  %v797_v52 = vstv %s796_s11  ;;  %v801_v55 = vstv %s799_s5  ;;  %p1470_p6 = pneg %p1469_p4 }
 0x142   : > { %v705_v7 = vadd.f32 %v704_v63, %v700_v53  ;;  %p1476_p2 = por %p1475_p1, %p1474_p12 }
 0x143   : > { %v727_v11 = vadd.f32 %v726_v4, %v722_v54  ;;  %v730_v12 = vmul.f32 %v729_v61, %v683_v3  ;;  %v749_v13 = vmul.f32 %v748_v1, %v683_v3  ;;  %v768_v14 = vmul.f32 %v767_v2, %v683_v3 }
 0x144   : > { %v733_v15 = vmul.f32 %v732_v0, %v705_v7  ;;  %v752_v16 = vmul.f32 %v751_v5, %v705_v7  ;;  %v771_v17 = vmul.f32 %v770_v6, %v705_v7  ;;  %p1477_p7 = pnand %p1476_p2, %p1470_p6 }
 0x145   : > { %v737_v18 = vmul.f32 %v736_v8, %v727_v11  ;;  %v756_v19 = vmul.f32 %v755_v9, %v727_v11  ;;  %v775_v20 = vmul.f32 %v774_v10, %v727_v11 }
 0x146   : > { %v734_v21 = vadd.f32 %v733_v15, %v730_v12  ;;  %v753_v22 = vadd.f32 %v752_v16, %v749_v13  ;;  %v772_v23 = vadd.f32 %v771_v17, %v768_v14 }
 0x148   : > { %v738_v27 = vadd.f32 %v737_v18, %v734_v21  ;;  %v757_v28 = vadd.f32 %v756_v19, %v753_v22  ;;  %v776_v29 = vadd.f32 %v775_v20, %v772_v23 }
 0x14a   : > { %v741_v30 = vadd.f32 %v740_v24, %v738_v27  ;;  %v760_v31 = vadd.f32 %v759_v25, %v757_v28  ;;  %v779_v32 = vadd.f32 %v778_v26, %v776_v29 }
 0x14c   : > { %1249 = vtanh.f32 %v741_v30 }
 0x14d   : > { %1251 = vtanh.f32 %v760_v31 }
 0x14e   : > { %1253 = vtanh.f32 %v779_v32 }
 0x156   : > { %v1250_v35 = vpop.eup %1249 }
 0x157   : > { %v1252_v37 = vpop.eup %1251  ;;  %v745_v38 = vmul.f32 %v1250_v35, %v744_v33 }
 0x158   : > { %v1254_v39 = vpop.eup %1253  ;;  %v764_v40 = vmul.f32 %v1252_v37, %v763_v34 }
 0x159   : > { %v746_v42 = vadd.f32 %v745_v38, %v741_v30  ;;  %v783_v43 = vmul.f32 %v1254_v39, %v782_v36 }
 0x15a   : > { %v765_v45 = vadd.f32 %v764_v40, %v760_v31 }
 0x15b   : > { %v784_v47 = vadd.f32 %v783_v43, %v779_v32  ;;  %v787_v48 = vmul.f32 %v786_v41, %v746_v42 }
 0x15c   : > { %v790_v49 = vmul.f32 %v789_v44, %v765_v45 }
 0x15d   : > { %v794_v50 = vmul.f32 %v793_v46, %v784_v47 }
 0x15e   : > { %v791_v51 = vadd.f32 %v790_v49, %v787_v48 }
 0x160   : > { %v795_v53 = vadd.f32 %v794_v50, %v791_v51 }
 0x162   : > { %v798_v54 = vadd.f32 %v797_v52, %v795_v53 }
 0x164   : > { %1255 = vtanh.f32 %v798_v54 }
 0x16e   : > { %v1256_v56 = vpop.eup %1255 }
 0x16f   : > { %v802_v57 = vmul.f32 %v1256_v56, %v801_v55 }
 0x171   : > { %v803_v58 = vadd.f32 %v802_v57, %v798_v54 }
 0x173   : > { %804 = vst [vmem:[%s624_s6] sm:$0xff] %v803_v58 }
 0x174   : > { %1480 = shalt.err (!%p1477_p7)
}
 0x175   : > { %s1481_s8 = scalar_lea.hbm %s2099_s23, 128  ;;  %s1485_s3 = scalar_lea.hbm %s2160_s13, 512 }
 0x176   : > { %p1482_p8 = scmp.ne.s32.totalorder %s2099_s23, %s1481_s8  ;;  %p1486_p11 = scmp.lt.u32.totalorder %s2099_s23, %s2160_s13 }
 0x177   : > { %p1487_p10 = scmp.lt.u32.totalorder %s1485_s3, %s1481_s8  ;;  %p1489_p13 = scmp.lt.u32.totalorder %s1481_s8, %s2099_s23 }
 0x178   : > { %p1483_p9 = pnand %p1482_p8, %p2222_p3 }
 0x179   : > { %p1488_p0 = por %p1487_p10, %p1486_p11 }
 0x17a   : > { %p1484_p5 = pneg %p1483_p9 }
 0x17b   : > { %p1490_p4 = por %p1489_p13, %p1488_p0 }
 0x17d   : > { %p1491_p6 = pnand %p1490_p4, %p1484_p5 }
 0x17f   : > { %1494 = shalt.err (!%p1491_p6)
}
 0x180   : > { %1104 = dma.vmem_to_hbm [thread:$0]  (%p2222_p3), %s2101_s7, 128, %s2099_s23, %s806_s24  }
 0x181 PF: > { %p1176_p12 = scmp.ge.s32.totalorder %s1577_s30, 2  ;;  %s832_s9 = sand.u32 1, %s1557_s25  }
 0x182   : > { %p2223_p1 = scmp.ne.s32.totalorder %s2210_s22, 0  ;;  %s833_s10 = scalar_lea.sflag [#allocation4], %s832_s9 }
 0x184   : > { %p1148_p2 = pnand %p1176_p12, %p2223_p1 }
 0x186   : > { %1552 = dma.done.wait (!%p1148_p2), %s833_s10, 128  }
 0x187   : > { %1554 = vsyncadd (!%p1148_p2), %s833_s10, 4294967168  ;;  %s36_s30 = sadd.s32 1, %s1577_s30   ;;  %s2224_s2 = sld [smem:[#allocation36_spill]] }
 0x188   : > { %p33_p7 = scmp.ge.s32.totalorder %s36_s30, 6   ;;  %s2225_s28 = sld [smem:[#allocation34_spill]] }
 0x189   : > { %s2226_s29 = sld [smem:[#allocation35_spill]]  ;;  %s2227_s25 = smov %s1561_s26 }
 0x18a   : > { %s2228_s26 = smov %s1565_s27  ;;  %35 = sbr.rel (!%p33_p7) target bundleno = 27 (0x1b), region = 166 }
 0x18d   : > { %s2229_s27 = smov %s2224_s2 }
 0x191   :  { %838 = vsyncpa [#allocation3], 1 }
 0x192   :  { %840 = vsyncpa [#allocation3 + $0x1], 1 }
 0x193   :  { %841 = vsyncpa [#allocation4], 1 }
 0x194   :  { %843 = vsyncpa [#allocation4 + $0x1], 1 }
 0x195   :  { %844 = vsyncpa [#allocation5], 1 }
 0x196   :  { %846 = vsyncpa [#allocation5 + $0x1], 1 }
 0x197   :  { %847 = vsyncpa [#allocation8], 1 }
 0x198   :  { %848 = vsyncpa [#allocation11], 1 }
 0x199   :  { %849 = vsyncpa [#allocation14], 1 }
 0x19a   :  { %850 = vsyncpa [#allocation17], 1 }
 0x19b   :  { %851 = vsyncpa [#allocation20], 1 }
 0x19c   :  { %852 = vsyncpa [#allocation23], 1 }

</bundles_post_ra>
